<compile_context>
chip_gen: v7x
topology: tpu7x:2x2x1
jax: 0.10.0
libtpu: 0.0.40
codegen_flags: <defaults>
</compile_context>

<pallas_src>
import jax
import jax.numpy as jnp
from jax.experimental import pallas as pl
from jax.experimental.pallas import tpu as pltpu

# RoBERTa / CodeBERT token-id constants (deterministic, in-script).
PAD_TOKEN_ID = 1          # roberta <pad>
MASK_TOKEN_ID = 50264     # roberta <mask>
SAFE_TOKEN_ID = 50265     # added special token 'safe'
UNSAFE_TOKEN_ID = 50266   # added special token 'unsafe'

_LANE = 128        # lane width (last-dim tiling unit)
_SUBLANE_I8 = 32   # int8 sublane packing unit


def _features_prompt_kernel(ids_ref, masks_ref, mlm_pos_ref):
    ids = ids_ref[...]                                        # (TB, L) int32

    # attention_mask: 1 where not padding, 0 where padding (int8 output).
    masks_ref[...] = (ids != PAD_TOKEN_ID).astype(masks_ref.dtype)

    # masked_pos: index of the <mask> token per row.  Cross-lane reduce on
    # the XLU, then stored lane-dense as a (1, TB) row so the store is a
    # handful of full-width vst's instead of TB/8 masked vst.msk's.
    pos = jax.lax.broadcasted_iota(jnp.int32, ids.shape, 1)
    is_mask = (ids == MASK_TOKEN_ID).astype(jnp.int32)
    row_pos = jnp.sum(is_mask * pos, axis=1)                  # (TB,)
    mlm_pos_ref[...] = row_pos[None, :]                       # (1, TB)


def _round_up(x, m):
    return ((x + m - 1) // m) * m


def _choose_tiling(B, L):
    """Pick (B_pad, L_pad, TB).

    L is padded to a lane multiple.  The batch tile is sized by bytes
    (~4 MiB int32 ids tile) while keeping the double-buffered footprint
    (~10*TB*L bytes for ids in + int8 masks out) inside v5e's 16 MiB default
    scoped VMEM with headroom (also well inside v7x's 64 MiB physical VMEM).
    """
    L_pad = _round_up(L, _LANE)
    tb_cap = min((4 << 20) // (4 * L_pad),     # ~4 MiB int32 ids tile target
                 (12 << 20) // (10 * L_pad))   # v5e-safe double-buffered cap
    tb_cap = max(_LANE, (tb_cap // _LANE) * _LANE)

    b32 = _round_up(B, _SUBLANE_I8)
    if b32 <= _LANE:
        # Tiny batch: one full-array block (full-dim BlockSpec escapes apply).
        return b32, L_pad, b32

    # >= 2 lane-aligned tiles so v7x's two TensorCores both get work; large
    # batches still stream with byte-sized tiles near the HBM roofline.
    tb = min(tb_cap, _round_up(pl.cdiv(b32, 2), _LANE))
    b_pad = _round_up(b32, tb)
    return b_pad, L_pad, tb


def _features_prompt_pallas(ids_p, B_pad, L_pad, TB):
    grid = (B_pad // TB,)
    # Estimated double-buffered VMEM use; only raise the limit when the
    # (pathologically long-L) footprint would exceed the conservative budget.
    est_vmem = 2 * (5 * TB * L_pad + 4 * TB) + (1 << 20)
    return pl.pallas_call(
        _features_prompt_kernel,
        out_shape=(
            jax.ShapeDtypeStruct((B_pad, L_pad), jnp.int8),   # masks
            jax.ShapeDtypeStruct((1, B_pad), jnp.int32),      # mlm_pos (lane-dense)
        ),
        grid=grid,
        in_specs=[pl.BlockSpec((TB, L_pad), lambda i: (i, 0))],
        out_specs=(
            pl.BlockSpec((TB, L_pad), lambda i: (i, 0)),
            pl.BlockSpec((1, TB), lambda i: (0, i)),
        ),
        compiler_params=pltpu.CompilerParams(
            dimension_semantics=("parallel",),
            vmem_limit_bytes=int(est_vmem) if est_vmem > (12 << 20) else None),
        cost_estimate=pl.CostEstimate(
            flops=3 * B_pad * L_pad,
            transcendentals=0,
            bytes_accessed=5 * B_pad * L_pad + 4 * B_pad),
    )(ids_p)


def features_prompt_forward(ids, labels_int, *, force_pallas=False,
                            min_pallas_elems=64 * 1024):
    """ids: (B, L) int32 token ids; labels_int: (B,) int32 (0=safe, 1=unsafe).

    Returns (ids, masks[int8], mlm_tokens(B,1), mlm_pos(B,1), labels_int),
    matching the PyTorch module's return structure.
    """
    ids = ids.astype(jnp.int32)
    B, L = ids.shape

    if (not force_pallas) and (B * L < min_pallas_elems):
        # Tiny-batch fast path: pallas_call launch/step overhead would dwarf
        # the work; XLA fuses the compare + reduce essentially for free.
        masks = (ids != PAD_TOKEN_ID).astype(jnp.int8)
        pos = jnp.arange(L, dtype=jnp.int32)[None, :]
        mlm_pos = jnp.sum(jnp.where(ids == MASK_TOKEN_ID, pos, 0),
                          axis=1, keepdims=True).astype(jnp.int32)
    else:
        B_pad, L_pad, TB = _choose_tiling(B, L)
        ids_p = ids
        if B_pad != B or L_pad != L:
            # Pad rows/columns with PAD_TOKEN_ID: keeps tiles large, uniform
            # and fully lane/sublane aligned; padded rows/cols are sliced off.
            ids_p = jnp.pad(ids, ((0, B_pad - B), (0, L_pad - L)),
                            constant_values=PAD_TOKEN_ID)
        masks_p, mlm_pos_row = _features_prompt_pallas(ids_p, B_pad, L_pad, TB)
        masks = masks_p[:B, :L]
        mlm_pos = mlm_pos_row[0, :B].reshape(B, 1)

    # masked_tokens: label word's first token id ('safe' -> SAFE token id,
    # otherwise UNSAFE).  Trivial per-row select done in plain JAX so it
    # fuses for free instead of being a lane-sparse Pallas output.
    mlm_tokens = jnp.where(labels_int.astype(jnp.int32) == 0,
                           SAFE_TOKEN_ID, UNSAFE_TOKEN_ID
                           ).astype(jnp.int32).reshape(B, 1)

    # labels_int passthrough: returned as-is (no copy, no extra buffer).
    return ids, masks, mlm_tokens, mlm_pos, labels_int.astype(jnp.int32)


def _build_synthetic_batch(key, batch=8, seq_len=128):
    """Synthetic 'tokenized' batch (stands in for file reading + tokenizer)."""
    k_ids, k_len, k_lab = jax.random.split(key, 3)
    ids = jax.random.randint(k_ids, (batch, seq_len), 3, 50000, dtype=jnp.int32)
    lengths = jax.random.randint(k_len, (batch,), 10, seq_len - 2, dtype=jnp.int32)
    pos = jnp.arange(seq_len, dtype=jnp.int32)[None, :]
    lengths_b = lengths[:, None]
    ids = jnp.where(pos >= lengths_b, PAD_TOKEN_ID, ids)          # pad tail
    ids = jnp.where(pos == (lengths_b - 1), MASK_TOKEN_ID, ids)   # <mask> token
    labels_int = jax.random.randint(k_lab, (batch,), 0, 2, dtype=jnp.int32)
    return ids, labels_int, lengths


if __name__ == "__main__":
    key = jax.random.PRNGKey(0)

    def _check(B, L, force_pallas):
        k = jax.random.fold_in(key, B * 100003 + L)
        ids, labels_int, lengths = _build_synthetic_batch(k, batch=B, seq_len=L)
        out = features_prompt_forward(ids, labels_int, force_pallas=force_pallas)
        out = jax.block_until_ready(out)
        ids_o, masks, mlm_tokens, mlm_pos, labels_out = out

        ref_masks = (ids != PAD_TOKEN_ID).astype(jnp.int8)
        ref_pos = (lengths - 1).reshape(B, 1).astype(jnp.int32)
        ref_tok = jnp.where(labels_int.reshape(B, 1) == 0,
                            SAFE_TOKEN_ID, UNSAFE_TOKEN_ID)
        assert masks.shape == (B, L) and masks.dtype == jnp.int8
        assert jnp.array_equal(masks, ref_masks)
        assert mlm_pos.shape == (B, 1) and jnp.array_equal(mlm_pos, ref_pos)
        assert mlm_tokens.shape == (B, 1) and jnp.array_equal(mlm_tokens, ref_tok)
        assert labels_out.shape == (B,) and jnp.array_equal(labels_out, labels_int)
        assert jnp.array_equal(ids_o, ids)

    # Small demo shape through the Pallas path (single full-array block).
    _check(8, 128, force_pallas=True)
    # Awkward B/L exercising B/L padding, a multi-tile grid, and the
    # lane-dense mlm_pos store path.
    _check(300, 200, force_pallas=True)
    # Tiny-batch plain-JAX fast path.
    _check(8, 128, force_pallas=False)

    print("KERNEL_OK")
</pallas_src>

<mosaic_0001>
module attributes {stable_mosaic.version = 11 : i64} {
  func.func @_features_prompt_kernel(%arg0: i32, %arg1: memref<32x128xi32, #tpu.memory_space<vmem>>, %arg2: memref<32x128xi8, #tpu.memory_space<vmem>>, %arg3: memref<1x32xi32, #tpu.memory_space<vmem>>) attributes {dimension_semantics = [#tpu.dimension_semantics<parallel>], iteration_bounds = array<i64: 1>, scalar_prefetch = 0 : i64, scratch_operands = 0 : i64, tpu.core_type = #tpu.core_type<tc>, window_params = [{transform_indices = @transform_0, window_bounds = array<i64: 32, 128>}, {transform_indices = @transform_1, window_bounds = array<i64: 32, 128>}, {transform_indices = @transform_2, window_bounds = array<i64: 1, 32>}]} {
    %c0 = arith.constant 0 : index
    %c0_0 = arith.constant 0 : index
    %0 = vector.load %arg1[%c0, %c0_0] : memref<32x128xi32, #tpu.memory_space<vmem>>, vector<32x128xi32>
    %c1_i32 = arith.constant 1 : i32
    %1 = vector.broadcast %c1_i32 : i32 to vector<32x128xi32>
    %2 = arith.cmpi ne, %0, %1 : vector<32x128xi32>
    %3 = arith.extui %2 : vector<32x128xi1> to vector<32x128xi8>
    %c0_1 = arith.constant 0 : index
    %c0_2 = arith.constant 0 : index
    %4 = vector.load %arg2[%c0_1, %c0_2] : memref<32x128xi8, #tpu.memory_space<vmem>>, vector<32x128xi8>
    tpu.vector_store %arg2[%c0_1, %c0_2], %3 {strides = array<i32>} : memref<32x128xi8, #tpu.memory_space<vmem>>, vector<32x128xi8>,
    %5 = tpu.iota {dimensions = array<i32: 1>} : vector<32x128xi32>
    %c50264_i32 = arith.constant 50264 : i32
    %6 = vector.broadcast %c50264_i32 : i32 to vector<32x128xi32>
    %7 = arith.cmpi eq, %0, %6 : vector<32x128xi32>
    %8 = arith.extui %7 : vector<32x128xi1> to vector<32x128xi32>
    %9 = arith.muli %8, %5 : vector<32x128xi32>
    %cst = arith.constant dense<0> : vector<32xi32>
    %10 = vector.multi_reduction <add>, %9, %cst [1] : vector<32x128xi32> to vector<32xi32>
    %11 = vector.shape_cast %10 : vector<32xi32> to vector<1x32xi32>
    %c0_3 = arith.constant 0 : index
    %c0_4 = arith.constant 0 : index
    %12 = vector.load %arg3[%c0_3, %c0_4] : memref<1x32xi32, #tpu.memory_space<vmem>>, vector<1x32xi32>
    tpu.vector_store %arg3[%c0_3, %c0_4], %11 {strides = array<i32>} : memref<1x32xi32, #tpu.memory_space<vmem>>, vector<1x32xi32>,
    return
  }
  func.func @transform_0(%arg0: i32) -> (i32, i32) {
    %c0_i32 = arith.constant 0 : i32
    %c0_i32_0 = arith.constant 0 : i32
    return %arg0, %c0_i32 : i32, i32
  }
  func.func @transform_1(%arg0: i32) -> (i32, i32) {
    %c0_i32 = arith.constant 0 : i32
    %c0_i32_0 = arith.constant 0 : i32
    return %arg0, %c0_i32 : i32, i32
  }
  func.func @transform_2(%arg0: i32) -> (i32, i32) {
    %c0_i32 = arith.constant 0 : i32
    %c0_i32_0 = arith.constant 0 : i32
    return %c0_i32, %arg0 : i32, i32
  }
}

</mosaic_0001>

<bundles_post_ra>
// kernel: tpu_custom_call.1
= control target key start
LH: loop header
LB: loop body
LE: loop exit
PB: predicated region body
PF: predicated region fallthrough
CT: control target
= control target key end

     0   :  { %8 = vsyncpa [#allocation3], 0  ;;  %s310_s0 = inlined_call_operand.hbm [shape: s32[32,128], index: 0, kind: input, shape index: {}]   ;;  %s311_s1 = inlined_call_operand.hbm [shape: s8[32,128], index: 1, kind: output, shape index: {0}]   ;;  %s312_s2 = inlined_call_operand.hbm [shape: s32[1,32], index: 2, kind: output, shape index: {1}]  }
   0x1   :  { %9 = vsyncpa [#allocation4], 0 }
   0x2   :  { %10 = vsyncpa [#allocation7], 0  ;;  %s237_s9 = smov [#allocation2]   ;;  %s165_s13 = scalar_lea.hbm %s310_s0, 512 }
   0x3   :  { %s16_s10 = sshll.u32 %s237_s9, 4  ;;  %p166_p0 = scmp.ne.s32.totalorder %s310_s0, %s165_s13  ;;  %s17_s10 = int_to_ptr.vmem [resolvable:$true] %s16_s10 }
   0x4   :  { %p169_p1 = scmp.lt.u32.totalorder %s165_s13, %s310_s0 }
   0x6   :  { %p171_p2 = pnand %p169_p1, %p166_p0 }
   0x8   :  { %174 = shalt.err (!%p171_p2)
}
   0x9   :  { %s175_s18 = scalar_lea.vmem %s17_s10, 512  ;;  %p180_p4 = scmp.lt.s32.totalorder %s17_s10, %s17_s10 }
   0xa   :  { %p176_p3 = scmp.ne.s32.totalorder %s17_s10, %s175_s18  ;;  %p181_p5 = scmp.lt.s32.totalorder %s175_s18, %s175_s18 }
   0xc   :  { %p182_p6 = por %p181_p5, %p180_p4 }
   0xe   :  { %p183_p7 = pnand %p182_p6, %p176_p3 }
  0x10   :  { %186 = shalt.err (!%p183_p7)
}
  0x11   :  { %s238_s19 = smov 128   ;;  %s239_s20 = smov 8  }
  0x12   :  { %22 = dma.hbm_to_vmem [thread:$0]  %s310_s0, 512, %s17_s10, [#allocation3], %s238_s19, %s238_s19, %s239_s20  }
  0x13   :  { %231 = dma.done.wait [#allocation3], 512  }
  0x14   :  { %232 = vsyncadd [#allocation3], 4294966784  ;;  %v41_v0 = vlaneseq  ;;  %v30_v2 = vld [vmem:[#allocation2 + $0x10] sm:$0xff]  ;;  %v28_v3 = vld [vmem:[#allocation2] sm:$0xff]  ;;  %v240_v6 = vmov 0   ;;  %s241_s0 = smov [#allocation5]  }
  0x15   :  { %v29_v4 = vld [vmem:[#allocation2 + $0x8] sm:$0xff]  ;;  %vm45_vm0 = vcmp.eq.s32.totalorder %v30_v2, 50264  ;;  %vm43_vm1 = vcmp.eq.s32.totalorder %v28_v3, 50264  ;;  %v31_v5 = vld [vmem:[#allocation2 + $0x18] sm:$0xff]  ;;  %vm32_vm4 = vcmp.ne.s32.totalorder %v28_v3, 1  ;;  %vm34_vm6 = vcmp.ne.s32.totalorder %v30_v2, 1 }
  0x16   :  { %v270_v1 = vand.u32 127, %v41_v0  ;;  %vm44_vm2 = vcmp.eq.s32.totalorder %v29_v4, 50264  ;;  %v49_v7 = vsel %vm45_vm0, 1, %v240_v6  ;;  %v47_v8 = vsel %vm43_vm1, 1, %v240_v6  ;;  %s136_s23 = sshll.u32 %s241_s0, 4  ;;  %s137_s23 = int_to_ptr.vmem [resolvable:$true] %s136_s23 }
  0x17   :  { %v48_v9 = vsel %vm44_vm2, 1, %v240_v6  ;;  %vm46_vm3 = vcmp.eq.s32.totalorder %v31_v5, 50264  ;;  %v276_v31 = vshrl.u32 %v41_v0, 7  ;;  %vm33_vm5 = vcmp.ne.s32.totalorder %v29_v4, 1  ;;  %s187_s24 = scalar_lea.vmem %s137_s23, 128  ;;  %p192_p9 = scmp.lt.s32.totalorder %s137_s23, %s137_s23 }
  0x18   :  { %v53_v10 = vmul.u32 %v49_v7, %v270_v1  ;;  %v51_v11 = vmul.u32 %v47_v8, %v270_v1  ;;  %v50_v12 = vsel %vm46_vm3, 1, %v240_v6  ;;  %v107_v33 = vadd.s32 4294967288, %v270_v1  ;;  %vm36_vm8 = vmpackc.low %vm33_vm5, %vm32_vm4  ;;  %p188_p8 = scmp.ne.s32.totalorder %s137_s23, %s187_s24  ;;  %p193_p10 = scmp.lt.s32.totalorder %s187_s24, %s187_s24 }
  0x19   :  { %v52_v13 = vmul.u32 %v48_v9, %v270_v1  ;;  %v54_v17 = vmul.u32 %v50_v12, %v270_v1  ;;  %v105_v32 = vsub.s32 %v270_v1, %v276_v31  ;;  %v114_v35 = vadd.s32 4294967280, %v270_v1 }
  0x1a   :  { %v80_v14 = vshrl.u32 %v53_v10, 16  ;;  %v56_v15 = vshrl.u32 %v51_v11, 16  ;;  %v55_v16 = vand.u32 65535, %v51_v11  ;;  %v79_v27 = vand.u32 65535, %v53_v10  ;;  %p194_p11 = por %p193_p10, %p192_p9 }
  0x1b   :  { %v68_v18 = vshrl.u32 %v52_v13, 16  ;;  %v67_v23 = vand.u32 65535, %v52_v13  ;;  %v92_v24 = vshrl.u32 %v54_v17, 16  ;;  %v91_v28 = vand.u32 65535, %v54_v17 }
  0x1c   :  { %v82_v19 = vcvt.s32.f32 %v80_v14  ;;  %v58_v20 = vcvt.s32.f32 %v56_v15  ;;  %v57_v22 = vcvt.s32.f32 %v55_v16  ;;  %v81_v29 = vcvt.s32.f32 %v79_v27  ;;  %p195_p12 = pnand %p194_p11, %p188_p8 }
  0x1d   :  { %v70_v21 = vcvt.s32.f32 %v68_v18  ;;  %v69_v25 = vcvt.s32.f32 %v67_v23  ;;  %v94_v26 = vcvt.s32.f32 %v92_v24  ;;  %v93_v30 = vcvt.s32.f32 %v91_v28 }
  0x1e   :  { %85 = vadd.xlane.f32.xlu1 %v82_v19  ;;  %61 = vadd.xlane.f32.xlu0 %v58_v20  ;;  %v110_v34 = vsub.s32 %v107_v33, %v276_v31  ;;  %v121_v36 = vadd.s32 4294967272, %v270_v1  ;;  %v117_v37 = vsub.s32 %v114_v35, %v276_v31  ;;  %vm35_vm7 = vcmp.ne.s32.totalorder %v31_v5, 1 }
  0x1f   :  { %vm37_vm9 = vmpackc.low %vm35_vm7, %vm34_vm6 }
  0x20   :  { %v124_v38 = vsub.s32 %v121_v36, %v276_v31  ;;  %vm38_vm10 = vmpackc.even %vm37_vm9, %vm36_vm8 }
  0x21   :  { %v39_v39 = vsel %vm38_vm10, 16843009, %v240_v6 }
  0x22   :  { %73 = vadd.xlane.f32.xlu0 %v70_v21  ;;  %59 = vadd.xlane.f32.xlu1 %v57_v22  ;;  %40 = vst [vmem:[#allocation5] sm:$0xff] %v39_v39 }
  0x26   :  { %71 = vadd.xlane.f32.xlu0 %v69_v25  ;;  %97 = vadd.xlane.f32.xlu1 %v94_v26 }
  0x2a   :  { %83 = vadd.xlane.f32.xlu0 %v81_v29  ;;  %95 = vadd.xlane.f32.xlu1 %v93_v30 }
  0x2b   :  { %198 = shalt.err (!%p195_p12)
}
  0x2c   :  { %s199_s27 = scalar_lea.hbm %s311_s1, 128 }
  0x2d   :  { %p200_p13 = scmp.ne.s32.totalorder %s311_s1, %s199_s27  ;;  %p203_p0 = scmp.lt.u32.totalorder %s199_s27, %s311_s1 }
  0x2f   :  { %p205_p1 = pnand %p203_p0, %p200_p13 }
  0x31   :  { %208 = shalt.err (!%p205_p1)
}
  0x32   :  { %139 = dma.vmem_to_hbm [thread:$0]  %s137_s23, 128, %s311_s1, [#allocation4]   ;;  %vm112_vm11 = vcmask 130112   ;;  %vm119_vm12 = vcmask 195712   ;;  %vm126_vm13 = vcmask 261312   ;;  %vm128_vm14 = vcmask 253952  }
  0x33   :  { %s242_s1 = smov [#allocation6]  }
  0x34   :  { %s146_s6 = sshll.u32 %s242_s1, 4  ;;  %s147_s6 = int_to_ptr.vmem [resolvable:$true] %s146_s6 }
  0x35   :  { %s209_s7 = scalar_lea.vmem %s147_s6, 16  ;;  %s213_s8 = scalar_lea.vmem %s147_s6, 32 }
  0x36   :  { %p210_p2 = scmp.ne.s32.totalorder %s147_s6, %s209_s7  ;;  %p214_p3 = scmp.lt.s32.totalorder %s147_s6, %s147_s6 }
  0x37   :  { %p215_p4 = scmp.lt.s32.totalorder %s213_s8, %s209_s7 }
  0x39   :  { %p216_p5 = por %p215_p4, %p214_p3 }
  0x3b   :  { %p217_p6 = pnand %p216_p5, %p210_p2 }
  0xab   :  { %v86_v40 = vpop.xlane.xlu1 %85  ;;  %v62_v41 = vpop.xlane.xlu0 %61 }
  0xac   :  { %v64_v42 = vcvt.f32.s32 %v62_v41  ;;  %v88_v48 = vcvt.f32.s32 %v86_v40 }
  0xae   :  { %v65_v47 = vshll.u32 %v64_v42, 16  ;;  %v89_v57 = vshll.u32 %v88_v48, 16 }
  0xaf   :  { %v74_v43 = vpop.xlane.xlu0 %73  ;;  %v60_v44 = vpop.xlane.xlu1 %59 }
  0xb0   :  { %v76_v45 = vcvt.f32.s32 %v74_v43  ;;  %v63_v46 = vcvt.f32.s32 %v60_v44 }
  0xb2   :  { %v77_v51 = vshll.u32 %v76_v45, 16  ;;  %v66_v52 = vadd.s32 %v65_v47, %v63_v46 }
  0xb3   :  { %v72_v49 = vpop.xlane.xlu0 %71  ;;  %v98_v50 = vpop.xlane.xlu1 %97 }
  0xb4   :  { %v75_v53 = vcvt.f32.s32 %v72_v49  ;;  %v100_v54 = vcvt.f32.s32 %v98_v50  ;;  %v106_v60 = vrot.slane %v66_v52, %v105_v32 }
  0xb6   :  { %v78_v55 = vadd.s32 %v77_v51, %v75_v53  ;;  %v101_v56 = vshll.u32 %v100_v54, 16 }
  0xb7   :  { %v84_v58 = vpop.xlane.xlu0 %83  ;;  %v96_v59 = vpop.xlane.xlu1 %95 }
  0xb8   :  { %v111_v61 = vrot.slane %v78_v55, %v110_v34  ;;  %v87_v62 = vcvt.f32.s32 %v84_v58  ;;  %v99_v63 = vcvt.f32.s32 %v96_v59 }
  0xba   :  { %v90_v0 = vadd.s32 %v89_v57, %v87_v62  ;;  %v102_v1 = vadd.s32 %v101_v56, %v99_v63  ;;  %v113_v2 = vsel %vm112_vm11, %v111_v61, %v106_v60 }
  0xbc   :  { %v118_v3 = vrot.slane %v90_v0, %v117_v37  ;;  %v125_v4 = vrot.slane %v102_v1, %v124_v38 }
  0xbe   :  { %v120_v5 = vsel %vm119_vm12, %v118_v3, %v113_v2 }
  0xbf   :  { %v127_v6 = vsel %vm126_vm13, %v125_v4, %v120_v5 }
  0xc0   :  { %129 = vst.msk [vmem:[#allocation6] sm:$0x1] %vm128_vm14, %v127_v6 }
  0xc1   :  { %220 = shalt.err (!%p217_p6)
}
  0xc2   :  { %s221_s11 = scalar_lea.hbm %s312_s2, 16 }
  0xc3   :  { %p222_p7 = scmp.ne.s32.totalorder %s312_s2, %s221_s11  ;;  %p225_p8 = scmp.lt.u32.totalorder %s221_s11, %s312_s2 }
  0xc5   :  { %p227_p9 = pnand %p225_p8, %p222_p7 }
  0xc7   :  { %230 = shalt.err (!%p227_p9)
}
  0xc8   :  { %149 = dma.vmem_to_hbm [thread:$0]  %s147_s6, 16, %s312_s2, [#allocation7]  }
  0xc9   :  { %233 = dma.done.wait [#allocation4], 128  }
  0xca   :  { %234 = vsyncadd [#allocation4], 4294967168 }
  0xcb   :  { %235 = dma.done.wait [#allocation7], 16  }
  0xcc   :  { %236 = vsyncadd [#allocation7], 4294967280 }
  0xcd   :  { %156 = vsyncpa [#allocation3], 1 }
  0xce   :  { %157 = vsyncpa [#allocation4], 1 }
  0xcf   :  { %158 = vsyncpa [#allocation7], 1 }

</bundles_post_ra>
